<compile_context>
chip_gen: v5e
topology: v5e:2x2
jax: 0.10.0
libtpu: 0.0.40
codegen_flags: <defaults>
</compile_context>

<pallas_src>
import math

import jax
import jax.numpy as jnp
from jax import lax
from jax.experimental import pallas as pl
from jax.experimental.pallas import tpu as pltpu


def _temporal_weight_kernel(cur_ref, prev_ref, wd_ref, bd_ref, out_ref, pad_ref):
    # cur_ref/prev_ref: (C, H, W)  one batch image, channels first, W on the
    #                   128-lane axis, H on sublanes.
    # wd_ref : (2C*9,) SMEM  w_diff[c, ky, kx] flattened, index = c*9 + ky*3 + kx
    #                        (cur channels are 0..C-1, prev channels C..2C-1).
    # bd_ref : (1,)    SMEM  b_diff = b[0] - b[1]
    # out_ref: (C, H, W)
    # pad_ref: (H+2, W+2) f32 VMEM scratch -- reusable zero-padded plane.
    C, H, W = cur_ref.shape

    # Zero the scratch once; only the interior is overwritten per channel below,
    # so the 1-pixel zero border (padding=1) persists across all channels.
    pad_ref[...] = jnp.zeros_like(pad_ref)

    def make_conv_body(src_ref, chan_offset):
        def body(c, acc):
            # Load + cast one input-channel plane and drop it into the padded
            # scratch (liveness bounded to one plane + the accumulator).
            pad_ref[1:H + 1, 1:W + 1] = src_ref[c].astype(jnp.float32)
            base = (c + chan_offset) * 9
            # Hoist the lane-axis (kx) shifts out of the ky loop: 3 column
            # views, then 9 taps with row (sublane) offsets only.
            for kx in range(3):
                col = pad_ref[:, kx:kx + W]                      # (H+2, W)
                for ky in range(3):
                    acc = acc + wd_ref[base + ky * 3 + kx] * col[ky:ky + H, :]
            return acc
        return body

    # Single-output-channel 3x3 conv of the (virtual) concat(cur, prev):
    #   acc[y, x] = b_diff + sum_{c, ky, kx} w_diff[c, ky, kx] * xpad[c, y+ky, x+kx]
    acc = jnp.full((H, W), bd_ref[0], dtype=jnp.float32)
    acc = lax.fori_loop(0, C, make_conv_body(cur_ref, 0), acc)
    acc = lax.fori_loop(0, C, make_conv_body(prev_ref, C), acc)

    # softmax over 2 logits == sigmoid of the logit difference (f32, EUP).
    w_cur = jax.nn.sigmoid(acc)                                  # (H, W)

    # Blend: out = prev + w_cur * (cur - prev)  == w_cur*cur + (1-w_cur)*prev.
    @pl.loop(0, C)
    def _(c):
        cur_c = cur_ref[c].astype(jnp.float32)
        prev_c = prev_ref[c].astype(jnp.float32)
        out_ref[c] = (prev_c + w_cur * (cur_c - prev_c)).astype(out_ref.dtype)


def temporal_weight_level(cur_nchw, prev_nchw, weight_oihw, bias):
    """One pyramid level. cur/prev: (N, C, H, W); weight: (2, 2C, 3, 3); bias: (2,)."""
    N, C, H, W = cur_nchw.shape

    # Fold the two conv output channels into the logit difference:
    #   softmax([l0, l1])[0] == sigmoid(l0 - l1)
    w_diff = (weight_oihw[0] - weight_oihw[1]).astype(jnp.float32).reshape(2 * C * 9)
    b_diff = (bias[0:1] - bias[1:2]).astype(jnp.float32)         # (1,)

    itemsize = jnp.dtype(cur_nchw.dtype).itemsize
    blk_bytes = C * H * W * itemsize                              # one (C,H,W) block
    scratch_bytes = (H + 2) * (W + 2) * 4
    # ~2x (double-buffered cur + prev + out blocks) + scratch + slack, capped at 128 MiB.
    vmem_limit = int(min(128 * 2 ** 20,
                         max(16 * 2 ** 20,
                             2 * (3 * blk_bytes) + scratch_bytes + (2 << 20))))

    out = pl.pallas_call(
        _temporal_weight_kernel,
        out_shape=jax.ShapeDtypeStruct((N, C, H, W), cur_nchw.dtype),
        grid=(N,),
        in_specs=[
            pl.BlockSpec((None, C, H, W), lambda n: (n, 0, 0, 0)),   # cur
            pl.BlockSpec((None, C, H, W), lambda n: (n, 0, 0, 0)),   # prev
            pl.BlockSpec(memory_space=pltpu.MemorySpace.SMEM),        # w_diff
            pl.BlockSpec(memory_space=pltpu.MemorySpace.SMEM),        # b_diff
        ],
        out_specs=pl.BlockSpec((None, C, H, W), lambda n: (n, 0, 0, 0)),
        scratch_shapes=[pltpu.VMEM((H + 2, W + 2), jnp.float32)],
        compiler_params=pltpu.CompilerParams(
            dimension_semantics=("parallel",),
            vmem_limit_bytes=vmem_limit),
    )(cur_nchw, prev_nchw, w_diff, b_diff)
    return out


def init_temporal_weight_params(key, in_channels, num_levels, per_level_predictors):
    """Deterministic init matching the module: kaiming_uniform_(a=1) weight, zero bias."""
    num_preds = num_levels if per_level_predictors else 1
    fan_in = (2 * in_channels) * 3 * 3
    bound = math.sqrt(3.0 / fan_in)   # gain(leaky_relu, a=1) = 1
    params = []
    for _ in range(num_preds):
        key, sub = jax.random.split(key)
        w = jax.random.uniform(sub, (2, 2 * in_channels, 3, 3), jnp.float32,
                               minval=-bound, maxval=bound)
        b = jnp.zeros((2,), jnp.float32)
        params.append((w, b))
    return params


def temporal_weight_forward(params, cur_list, prev_list, per_level_predictors):
    out = []
    for l, (feat_cur, feat_prev) in enumerate(zip(cur_list, prev_list)):
        _l = l if per_level_predictors else 0
        w, b = params[_l]
        out.append(temporal_weight_level(feat_cur, feat_prev, w, b))
    return out


def _reference_forward(params, cur_list, prev_list, per_level_predictors):
    """Pure-JAX (XLA conv) reference of the PyTorch forward, for verification."""
    out = []
    for l, (fc, fp) in enumerate(zip(cur_list, prev_list)):
        w, b = params[l if per_level_predictors else 0]
        x = jnp.concatenate([fc, fp], axis=1)
        logits = jax.lax.conv_general_dilated(
            x, w, window_strides=(1, 1), padding=((1, 1), (1, 1)),
            dimension_numbers=("NCHW", "OIHW", "NCHW")) + b[None, :, None, None]
        sm = jax.nn.softmax(logits, axis=1)
        out.append(fc * sm[:, 0:1] + fp * sm[:, 1:2])
    return out


if __name__ == "__main__":
    key = jax.random.PRNGKey(0)
    B, C = 2, 4
    spatials = [16, 8]            # two FPN levels (same channel count, as asserted)
    per_level = True              # cfg.DD3D.FCOS3D.PER_LEVEL_PREDICTORS

    kp, kdata = jax.random.split(key)
    params = init_temporal_weight_params(kp, C, len(spatials), per_level)

    cur_list, prev_list = [], []
    for s in spatials:
        kdata, k1, k2 = jax.random.split(kdata, 3)
        cur_list.append(jax.random.normal(k1, (B, C, s, s), jnp.float32))
        prev_list.append(jax.random.normal(k2, (B, C, s, s), jnp.float32))

    outs = temporal_weight_forward(params, cur_list, prev_list, per_level)
    outs = [jax.block_until_ready(o) for o in outs]

    refs = _reference_forward(params, cur_list, prev_list, per_level)
    ok = all(bool(jnp.allclose(o, r, atol=1e-5, rtol=1e-5)) for o, r in zip(outs, refs))

    if ok:
        print("KERNEL_OK")
    else:
        print("MISMATCH")
</pallas_src>

<mosaic_0001>
module attributes {stable_mosaic.version = 11 : i64} {
  func.func @_temporal_weight_kernel(%arg0: i32, %arg1: memref<1x4x16x16xf32, #tpu.memory_space<vmem>>, %arg2: memref<1x4x16x16xf32, #tpu.memory_space<vmem>>, %arg3: memref<72xf32, #tpu.memory_space<smem>>, %arg4: memref<1xf32, #tpu.memory_space<smem>>, %arg5: memref<1x4x16x16xf32, #tpu.memory_space<vmem>>, %arg6: memref<18x18xf32, #tpu.memory_space<vmem>>) attributes {dimension_semantics = [#tpu.dimension_semantics<parallel>], iteration_bounds = array<i64: 2>, scalar_prefetch = 0 : i64, scratch_operands = 1 : i64, tpu.core_type = #tpu.core_type<tc>, window_params = [{transform_indices = @transform_0, window_bounds = array<i64: 1, 4, 16, 16>}, {transform_indices = @transform_1, window_bounds = array<i64: 1, 4, 16, 16>}, {transform_indices = @transform_2, window_bounds = array<i64: 72>}, {transform_indices = @transform_3, window_bounds = array<i64: 1>}, {transform_indices = @transform_4, window_bounds = array<i64: 1, 4, 16, 16>}]} {
    %cst = arith.constant 0.000000e+00 : f32
    %0 = vector.broadcast %cst : f32 to vector<18x18xf32>
    %c0 = arith.constant 0 : index
    %c0_0 = arith.constant 0 : index
    %1 = vector.load %arg6[%c0, %c0_0] : memref<18x18xf32, #tpu.memory_space<vmem>>, vector<18x18xf32>
    tpu.vector_store %arg6[%c0, %c0_0], %0 {strides = array<i32>} : memref<18x18xf32, #tpu.memory_space<vmem>>, vector<18x18xf32>,
    %c0_1 = arith.constant 0 : index
    %2 = memref.load %arg4[%c0_1] : memref<1xf32, #tpu.memory_space<smem>>
    %3 = vector.broadcast %2 : f32 to vector<16x16xf32>
    %c0_i32 = arith.constant 0 : i32
    %c4_i32 = arith.constant 4 : i32
    %4 = arith.addi %c0_i32, %c4_i32 : i32
    %c1_i32 = arith.constant 1 : i32
    %5 = scf.for %arg7 = %c0_i32 to %4 step %c1_i32 iter_args(%arg8 = %3) -> (vector<16x16xf32>)  : i32 {
      %c0_12 = arith.constant 0 : index
      %14 = arith.index_cast %arg7 : i32 to index
      %c0_13 = arith.constant 0 : index
      %c0_14 = arith.constant 0 : index
      %15 = vector.load %arg1[%c0_12, %14, %c0_13, %c0_14] : memref<1x4x16x16xf32, #tpu.memory_space<vmem>>, vector<1x1x16x16xf32>
      %16 = vector.shape_cast %15 : vector<1x1x16x16xf32> to vector<16x16xf32>
      %c1 = arith.constant 1 : index
      %c1_15 = arith.constant 1 : index
      %17 = vector.load %arg6[%c1, %c1_15] : memref<18x18xf32, #tpu.memory_space<vmem>>, vector<16x16xf32>
      tpu.vector_store %arg6[%c1, %c1_15], %16 {strides = array<i32>} : memref<18x18xf32, #tpu.memory_space<vmem>>, vector<16x16xf32>,
      %c0_i32_16 = arith.constant 0 : i32
      %18 = arith.addi %arg7, %c0_i32_16 : i32
      %c9_i32 = arith.constant 9 : i32
      %19 = arith.muli %18, %c9_i32 : i32
      %c0_17 = arith.constant 0 : index
      %c0_18 = arith.constant 0 : index
      %20 = vector.load %arg6[%c0_17, %c0_18] : memref<18x18xf32, #tpu.memory_space<vmem>>, vector<18x16xf32>
      %c0_i32_19 = arith.constant 0 : i32
      %21 = arith.addi %19, %c0_i32_19 : i32
      %c0_i32_20 = arith.constant 0 : i32
      %22 = arith.addi %21, %c0_i32_20 : i32
      %23 = arith.index_cast %22 : i32 to index
      %24 = memref.load %arg3[%23] : memref<72xf32, #tpu.memory_space<smem>>
      %25 = vector.extract_strided_slice %20 {offsets = [0, 0], sizes = [16, 16], strides = [1, 1]} : vector<18x16xf32> to vector<16x16xf32>
      %26 = vector.broadcast %24 : f32 to vector<16x16xf32>
      %27 = arith.mulf %26, %25 : vector<16x16xf32>
      %28 = arith.addf %arg8, %27 : vector<16x16xf32>
      %c3_i32 = arith.constant 3 : i32
      %29 = arith.addi %19, %c3_i32 : i32
      %c0_i32_21 = arith.constant 0 : i32
      %30 = arith.addi %29, %c0_i32_21 : i32
      %31 = arith.index_cast %30 : i32 to index
      %32 = memref.load %arg3[%31] : memref<72xf32, #tpu.memory_space<smem>>
      %33 = vector.extract_strided_slice %20 {offsets = [1, 0], sizes = [16, 16], strides = [1, 1]} : vector<18x16xf32> to vector<16x16xf32>
      %34 = vector.broadcast %32 : f32 to vector<16x16xf32>
      %35 = arith.mulf %34, %33 : vector<16x16xf32>
      %36 = arith.addf %28, %35 : vector<16x16xf32>
      %c6_i32 = arith.constant 6 : i32
      %37 = arith.addi %19, %c6_i32 : i32
      %c0_i32_22 = arith.constant 0 : i32
      %38 = arith.addi %37, %c0_i32_22 : i32
      %39 = arith.index_cast %38 : i32 to index
      %40 = memref.load %arg3[%39] : memref<72xf32, #tpu.memory_space<smem>>
      %41 = vector.extract_strided_slice %20 {offsets = [2, 0], sizes = [16, 16], strides = [1, 1]} : vector<18x16xf32> to vector<16x16xf32>
      %42 = vector.broadcast %40 : f32 to vector<16x16xf32>
      %43 = arith.mulf %42, %41 : vector<16x16xf32>
      %44 = arith.addf %36, %43 : vector<16x16xf32>
      %c0_23 = arith.constant 0 : index
      %c1_24 = arith.constant 1 : index
      %45 = vector.load %arg6[%c0_23, %c1_24] : memref<18x18xf32, #tpu.memory_space<vmem>>, vector<18x16xf32>
      %c0_i32_25 = arith.constant 0 : i32
      %46 = arith.addi %19, %c0_i32_25 : i32
      %c1_i32_26 = arith.constant 1 : i32
      %47 = arith.addi %46, %c1_i32_26 : i32
      %48 = arith.index_cast %47 : i32 to index
      %49 = memref.load %arg3[%48] : memref<72xf32, #tpu.memory_space<smem>>
      %50 = vector.extract_strided_slice %45 {offsets = [0, 0], sizes = [16, 16], strides = [1, 1]} : vector<18x16xf32> to vector<16x16xf32>
      %51 = vector.broadcast %49 : f32 to vector<16x16xf32>
      %52 = arith.mulf %51, %50 : vector<16x16xf32>
      %53 = arith.addf %44, %52 : vector<16x16xf32>
      %c3_i32_27 = arith.constant 3 : i32
      %54 = arith.addi %19, %c3_i32_27 : i32
      %c1_i32_28 = arith.constant 1 : i32
      %55 = arith.addi %54, %c1_i32_28 : i32
      %56 = arith.index_cast %55 : i32 to index
      %57 = memref.load %arg3[%56] : memref<72xf32, #tpu.memory_space<smem>>
      %58 = vector.extract_strided_slice %45 {offsets = [1, 0], sizes = [16, 16], strides = [1, 1]} : vector<18x16xf32> to vector<16x16xf32>
      %59 = vector.broadcast %57 : f32 to vector<16x16xf32>
      %60 = arith.mulf %59, %58 : vector<16x16xf32>
      %61 = arith.addf %53, %60 : vector<16x16xf32>
      %c6_i32_29 = arith.constant 6 : i32
      %62 = arith.addi %19, %c6_i32_29 : i32
      %c1_i32_30 = arith.constant 1 : i32
      %63 = arith.addi %62, %c1_i32_30 : i32
      %64 = arith.index_cast %63 : i32 to index
      %65 = memref.load %arg3[%64] : memref<72xf32, #tpu.memory_space<smem>>
      %66 = vector.extract_strided_slice %45 {offsets = [2, 0], sizes = [16, 16], strides = [1, 1]} : vector<18x16xf32> to vector<16x16xf32>
      %67 = vector.broadcast %65 : f32 to vector<16x16xf32>
      %68 = arith.mulf %67, %66 : vector<16x16xf32>
      %69 = arith.addf %61, %68 : vector<16x16xf32>
      %c0_31 = arith.constant 0 : index
      %c2 = arith.constant 2 : index
      %70 = vector.load %arg6[%c0_31, %c2] : memref<18x18xf32, #tpu.memory_space<vmem>>, vector<18x16xf32>
      %c0_i32_32 = arith.constant 0 : i32
      %71 = arith.addi %19, %c0_i32_32 : i32
      %c2_i32 = arith.constant 2 : i32
      %72 = arith.addi %71, %c2_i32 : i32
      %73 = arith.index_cast %72 : i32 to index
      %74 = memref.load %arg3[%73] : memref<72xf32, #tpu.memory_space<smem>>
      %75 = vector.extract_strided_slice %70 {offsets = [0, 0], sizes = [16, 16], strides = [1, 1]} : vector<18x16xf32> to vector<16x16xf32>
      %76 = vector.broadcast %74 : f32 to vector<16x16xf32>
      %77 = arith.mulf %76, %75 : vector<16x16xf32>
      %78 = arith.addf %69, %77 : vector<16x16xf32>
      %c3_i32_33 = arith.constant 3 : i32
      %79 = arith.addi %19, %c3_i32_33 : i32
      %c2_i32_34 = arith.constant 2 : i32
      %80 = arith.addi %79, %c2_i32_34 : i32
      %81 = arith.index_cast %80 : i32 to index
      %82 = memref.load %arg3[%81] : memref<72xf32, #tpu.memory_space<smem>>
      %83 = vector.extract_strided_slice %70 {offsets = [1, 0], sizes = [16, 16], strides = [1, 1]} : vector<18x16xf32> to vector<16x16xf32>
      %84 = vector.broadcast %82 : f32 to vector<16x16xf32>
      %85 = arith.mulf %84, %83 : vector<16x16xf32>
      %86 = arith.addf %78, %85 : vector<16x16xf32>
      %c6_i32_35 = arith.constant 6 : i32
      %87 = arith.addi %19, %c6_i32_35 : i32
      %c2_i32_36 = arith.constant 2 : i32
      %88 = arith.addi %87, %c2_i32_36 : i32
      %89 = arith.index_cast %88 : i32 to index
      %90 = memref.load %arg3[%89] : memref<72xf32, #tpu.memory_space<smem>>
      %91 = vector.extract_strided_slice %70 {offsets = [2, 0], sizes = [16, 16], strides = [1, 1]} : vector<18x16xf32> to vector<16x16xf32>
      %92 = vector.broadcast %90 : f32 to vector<16x16xf32>
      %93 = arith.mulf %92, %91 : vector<16x16xf32>
      %94 = arith.addf %86, %93 : vector<16x16xf32>
      scf.yield %94 : vector<16x16xf32>
    }
    %c4_i32_2 = arith.constant 4 : i32
    %c0_i32_3 = arith.constant 0 : i32
    %c4_i32_4 = arith.constant 4 : i32
    %6 = arith.addi %c0_i32_3, %c4_i32_4 : i32
    %c1_i32_5 = arith.constant 1 : i32
    %7 = scf.for %arg7 = %c0_i32_3 to %6 step %c1_i32_5 iter_args(%arg8 = %5) -> (vector<16x16xf32>)  : i32 {
      %c0_12 = arith.constant 0 : index
      %14 = arith.index_cast %arg7 : i32 to index
      %c0_13 = arith.constant 0 : index
      %c0_14 = arith.constant 0 : index
      %15 = vector.load %arg2[%c0_12, %14, %c0_13, %c0_14] : memref<1x4x16x16xf32, #tpu.memory_space<vmem>>, vector<1x1x16x16xf32>
      %16 = vector.shape_cast %15 : vector<1x1x16x16xf32> to vector<16x16xf32>
      %c1 = arith.constant 1 : index
      %c1_15 = arith.constant 1 : index
      %17 = vector.load %arg6[%c1, %c1_15] : memref<18x18xf32, #tpu.memory_space<vmem>>, vector<16x16xf32>
      tpu.vector_store %arg6[%c1, %c1_15], %16 {strides = array<i32>} : memref<18x18xf32, #tpu.memory_space<vmem>>, vector<16x16xf32>,
      %c4_i32_16 = arith.constant 4 : i32
      %18 = arith.addi %arg7, %c4_i32_16 : i32
      %c9_i32 = arith.constant 9 : i32
      %19 = arith.muli %18, %c9_i32 : i32
      %c0_17 = arith.constant 0 : index
      %c0_18 = arith.constant 0 : index
      %20 = vector.load %arg6[%c0_17, %c0_18] : memref<18x18xf32, #tpu.memory_space<vmem>>, vector<18x16xf32>
      %c0_i32_19 = arith.constant 0 : i32
      %21 = arith.addi %19, %c0_i32_19 : i32
      %c0_i32_20 = arith.constant 0 : i32
      %22 = arith.addi %21, %c0_i32_20 : i32
      %23 = arith.index_cast %22 : i32 to index
      %24 = memref.load %arg3[%23] : memref<72xf32, #tpu.memory_space<smem>>
      %25 = vector.extract_strided_slice %20 {offsets = [0, 0], sizes = [16, 16], strides = [1, 1]} : vector<18x16xf32> to vector<16x16xf32>
      %26 = vector.broadcast %24 : f32 to vector<16x16xf32>
      %27 = arith.mulf %26, %25 : vector<16x16xf32>
      %28 = arith.addf %arg8, %27 : vector<16x16xf32>
      %c3_i32 = arith.constant 3 : i32
      %29 = arith.addi %19, %c3_i32 : i32
      %c0_i32_21 = arith.constant 0 : i32
      %30 = arith.addi %29, %c0_i32_21 : i32
      %31 = arith.index_cast %30 : i32 to index
      %32 = memref.load %arg3[%31] : memref<72xf32, #tpu.memory_space<smem>>
      %33 = vector.extract_strided_slice %20 {offsets = [1, 0], sizes = [16, 16], strides = [1, 1]} : vector<18x16xf32> to vector<16x16xf32>
      %34 = vector.broadcast %32 : f32 to vector<16x16xf32>
      %35 = arith.mulf %34, %33 : vector<16x16xf32>
      %36 = arith.addf %28, %35 : vector<16x16xf32>
      %c6_i32 = arith.constant 6 : i32
      %37 = arith.addi %19, %c6_i32 : i32
      %c0_i32_22 = arith.constant 0 : i32
      %38 = arith.addi %37, %c0_i32_22 : i32
      %39 = arith.index_cast %38 : i32 to index
      %40 = memref.load %arg3[%39] : memref<72xf32, #tpu.memory_space<smem>>
      %41 = vector.extract_strided_slice %20 {offsets = [2, 0], sizes = [16, 16], strides = [1, 1]} : vector<18x16xf32> to vector<16x16xf32>
      %42 = vector.broadcast %40 : f32 to vector<16x16xf32>
      %43 = arith.mulf %42, %41 : vector<16x16xf32>
      %44 = arith.addf %36, %43 : vector<16x16xf32>
      %c0_23 = arith.constant 0 : index
      %c1_24 = arith.constant 1 : index
      %45 = vector.load %arg6[%c0_23, %c1_24] : memref<18x18xf32, #tpu.memory_space<vmem>>, vector<18x16xf32>
      %c0_i32_25 = arith.constant 0 : i32
      %46 = arith.addi %19, %c0_i32_25 : i32
      %c1_i32_26 = arith.constant 1 : i32
      %47 = arith.addi %46, %c1_i32_26 : i32
      %48 = arith.index_cast %47 : i32 to index
      %49 = memref.load %arg3[%48] : memref<72xf32, #tpu.memory_space<smem>>
      %50 = vector.extract_strided_slice %45 {offsets = [0, 0], sizes = [16, 16], strides = [1, 1]} : vector<18x16xf32> to vector<16x16xf32>
      %51 = vector.broadcast %49 : f32 to vector<16x16xf32>
      %52 = arith.mulf %51, %50 : vector<16x16xf32>
      %53 = arith.addf %44, %52 : vector<16x16xf32>
      %c3_i32_27 = arith.constant 3 : i32
      %54 = arith.addi %19, %c3_i32_27 : i32
      %c1_i32_28 = arith.constant 1 : i32
      %55 = arith.addi %54, %c1_i32_28 : i32
      %56 = arith.index_cast %55 : i32 to index
      %57 = memref.load %arg3[%56] : memref<72xf32, #tpu.memory_space<smem>>
      %58 = vector.extract_strided_slice %45 {offsets = [1, 0], sizes = [16, 16], strides = [1, 1]} : vector<18x16xf32> to vector<16x16xf32>
      %59 = vector.broadcast %57 : f32 to vector<16x16xf32>
      %60 = arith.mulf %59, %58 : vector<16x16xf32>
      %61 = arith.addf %53, %60 : vector<16x16xf32>
      %c6_i32_29 = arith.constant 6 : i32
      %62 = arith.addi %19, %c6_i32_29 : i32
      %c1_i32_30 = arith.constant 1 : i32
      %63 = arith.addi %62, %c1_i32_30 : i32
      %64 = arith.index_cast %63 : i32 to index
      %65 = memref.load %arg3[%64] : memref<72xf32, #tpu.memory_space<smem>>
      %66 = vector.extract_strided_slice %45 {offsets = [2, 0], sizes = [16, 16], strides = [1, 1]} : vector<18x16xf32> to vector<16x16xf32>
      %67 = vector.broadcast %65 : f32 to vector<16x16xf32>
      %68 = arith.mulf %67, %66 : vector<16x16xf32>
      %69 = arith.addf %61, %68 : vector<16x16xf32>
      %c0_31 = arith.constant 0 : index
      %c2 = arith.constant 2 : index
      %70 = vector.load %arg6[%c0_31, %c2] : memref<18x18xf32, #tpu.memory_space<vmem>>, vector<18x16xf32>
      %c0_i32_32 = arith.constant 0 : i32
      %71 = arith.addi %19, %c0_i32_32 : i32
      %c2_i32 = arith.constant 2 : i32
      %72 = arith.addi %71, %c2_i32 : i32
      %73 = arith.index_cast %72 : i32 to index
      %74 = memref.load %arg3[%73] : memref<72xf32, #tpu.memory_space<smem>>
      %75 = vector.extract_strided_slice %70 {offsets = [0, 0], sizes = [16, 16], strides = [1, 1]} : vector<18x16xf32> to vector<16x16xf32>
      %76 = vector.broadcast %74 : f32 to vector<16x16xf32>
      %77 = arith.mulf %76, %75 : vector<16x16xf32>
      %78 = arith.addf %69, %77 : vector<16x16xf32>
      %c3_i32_33 = arith.constant 3 : i32
      %79 = arith.addi %19, %c3_i32_33 : i32
      %c2_i32_34 = arith.constant 2 : i32
      %80 = arith.addi %79, %c2_i32_34 : i32
      %81 = arith.index_cast %80 : i32 to index
      %82 = memref.load %arg3[%81] : memref<72xf32, #tpu.memory_space<smem>>
      %83 = vector.extract_strided_slice %70 {offsets = [1, 0], sizes = [16, 16], strides = [1, 1]} : vector<18x16xf32> to vector<16x16xf32>
      %84 = vector.broadcast %82 : f32 to vector<16x16xf32>
      %85 = arith.mulf %84, %83 : vector<16x16xf32>
      %86 = arith.addf %78, %85 : vector<16x16xf32>
      %c6_i32_35 = arith.constant 6 : i32
      %87 = arith.addi %19, %c6_i32_35 : i32
      %c2_i32_36 = arith.constant 2 : i32
      %88 = arith.addi %87, %c2_i32_36 : i32
      %89 = arith.index_cast %88 : i32 to index
      %90 = memref.load %arg3[%89] : memref<72xf32, #tpu.memory_space<smem>>
      %91 = vector.extract_strided_slice %70 {offsets = [2, 0], sizes = [16, 16], strides = [1, 1]} : vector<18x16xf32> to vector<16x16xf32>
      %92 = vector.broadcast %90 : f32 to vector<16x16xf32>
      %93 = arith.mulf %92, %91 : vector<16x16xf32>
      %94 = arith.addf %86, %93 : vector<16x16xf32>
      scf.yield %94 : vector<16x16xf32>
    }
    %c4_i32_6 = arith.constant 4 : i32
    %8 = arith.negf %7 : vector<16x16xf32>
    %9 = math.exp %8 : vector<16x16xf32>
    %cst_7 = arith.constant 1.000000e+00 : f32
    %10 = vector.broadcast %cst_7 : f32 to vector<16x16xf32>
    %11 = arith.addf %10, %9 : vector<16x16xf32>
    %12 = arith.divf %10, %11 : vector<16x16xf32>
    %c0_i32_8 = arith.constant 0 : i32
    %c4_i32_9 = arith.constant 4 : i32
    %13 = arith.addi %c0_i32_8, %c4_i32_9 : i32
    %c1_i32_10 = arith.constant 1 : i32
    scf.for %arg7 = %c0_i32_8 to %13 step %c1_i32_10  : i32 {
      %c1_i32_12 = arith.constant 1 : i32
      %14 = arith.muli %arg7, %c1_i32_12 : i32
      %c0_i32_13 = arith.constant 0 : i32
      %15 = arith.addi %c0_i32_13, %14 : i32
      %c0_14 = arith.constant 0 : index
      %16 = arith.index_cast %15 : i32 to index
      %c0_15 = arith.constant 0 : index
      %c0_16 = arith.constant 0 : index
      %17 = vector.load %arg1[%c0_14, %16, %c0_15, %c0_16] : memref<1x4x16x16xf32, #tpu.memory_space<vmem>>, vector<1x1x16x16xf32>
      %18 = vector.shape_cast %17 : vector<1x1x16x16xf32> to vector<16x16xf32>
      %c0_17 = arith.constant 0 : index
      %19 = arith.index_cast %15 : i32 to index
      %c0_18 = arith.constant 0 : index
      %c0_19 = arith.constant 0 : index
      %20 = vector.load %arg2[%c0_17, %19, %c0_18, %c0_19] : memref<1x4x16x16xf32, #tpu.memory_space<vmem>>, vector<1x1x16x16xf32>
      %21 = vector.shape_cast %20 : vector<1x1x16x16xf32> to vector<16x16xf32>
      %22 = arith.subf %18, %21 : vector<16x16xf32>
      %23 = arith.mulf %12, %22 : vector<16x16xf32>
      %24 = arith.addf %21, %23 : vector<16x16xf32>
      %c0_20 = arith.constant 0 : index
      %25 = arith.index_cast %15 : i32 to index
      %c0_21 = arith.constant 0 : index
      %c0_22 = arith.constant 0 : index
      %26 = vector.load %arg5[%c0_20, %25, %c0_21, %c0_22] : memref<1x4x16x16xf32, #tpu.memory_space<vmem>>, vector<1x1x16x16xf32>
      %27 = vector.shape_cast %26 : vector<1x1x16x16xf32> to vector<16x16xf32>
      %28 = vector.shape_cast %24 : vector<16x16xf32> to vector<1x1x16x16xf32>
      tpu.vector_store %arg5[%c0_20, %25, %c0_21, %c0_22], %28 {strides = array<i32>} : memref<1x4x16x16xf32, #tpu.memory_space<vmem>>, vector<1x1x16x16xf32>,
    }
    %c4_i32_11 = arith.constant 4 : i32
    return
  }
  func.func @transform_0(%arg0: i32) -> (i32, i32, i32, i32) {
    %c0_i32 = arith.constant 0 : i32
    %c0_i32_0 = arith.constant 0 : i32
    %c0_i32_1 = arith.constant 0 : i32
    %c0_i32_2 = arith.constant 0 : i32
    return %arg0, %c0_i32, %c0_i32_0, %c0_i32_1 : i32, i32, i32, i32
  }
  func.func @transform_1(%arg0: i32) -> (i32, i32, i32, i32) {
    %c0_i32 = arith.constant 0 : i32
    %c0_i32_0 = arith.constant 0 : i32
    %c0_i32_1 = arith.constant 0 : i32
    %c0_i32_2 = arith.constant 0 : i32
    return %arg0, %c0_i32, %c0_i32_0, %c0_i32_1 : i32, i32, i32, i32
  }
  func.func @transform_2(%arg0: i32) -> i32 {
    %c0_i32 = arith.constant 0 : i32
    %c0_i32_0 = arith.constant 0 : i32
    return %c0_i32 : i32
  }
  func.func @transform_3(%arg0: i32) -> i32 {
    %c0_i32 = arith.constant 0 : i32
    %c0_i32_0 = arith.constant 0 : i32
    return %c0_i32 : i32
  }
  func.func @transform_4(%arg0: i32) -> (i32, i32, i32, i32) {
    %c0_i32 = arith.constant 0 : i32
    %c0_i32_0 = arith.constant 0 : i32
    %c0_i32_1 = arith.constant 0 : i32
    %c0_i32_2 = arith.constant 0 : i32
    return %arg0, %c0_i32, %c0_i32_0, %c0_i32_1 : i32, i32, i32, i32
  }
}

</mosaic_0001>

<bundles_post_ra>
// kernel: tpu_custom_call.1
= control target key start
LH: loop header
LB: loop body
LE: loop exit
PB: predicated region body
PF: predicated region fallthrough
CT: control target
= control target key end

     0   :  { %s1651_s0 = inlined_call_operand.hbm [shape: f32[2,4,16,16], index: 0, kind: input, shape index: {}]   ;;  %s1652_s1 = inlined_call_operand.hbm [shape: f32[2,4,16,16], index: 1, kind: input, shape index: {}]   ;;  %s1653_s2 = inlined_call_operand.vmem [shape: f32[72], index: 2, kind: input, shape index: {}]   ;;  %s1654_s3 = inlined_call_operand.<no memory space> [shape: f32[1], index: 3, kind: input, shape index: {}]   ;;  %s1655_s4 = inlined_call_operand.hbm [shape: f32[2,4,16,16], index: 4, kind: output, shape index: {}]  }
   0x1   :  { %1657 = sst [smem:[#allocation17_spill]] %s1653_s2 }
   0x2   :  { %9 = sst [smem:[#allocation3]] %s1654_s3 }
   0x3   :  { %10 = vsyncpa [#allocation5], 0 }
   0x4   :  { %12 = vsyncpa [#allocation5 + $0x1], 0 }
   0x5   :  { %13 = vsyncpa [#allocation9], 0 }
   0x6   :  { %15 = vsyncpa [#allocation9 + $0x1], 0 }
   0x7   :  { %16 = vsyncpa [#allocation7], 0 }
   0x8   :  { %17 = vsyncpa [#allocation6], 0 }
   0x9   :  { %19 = vsyncpa [#allocation6 + $0x1], 0  ;;  %s1295_s17 = smov 0   ;;  %s1297_s18 = smov 0  }
   0xa   :  { %s1299_s19 = smov 0   ;;  %s1301_s20 = smov 0  }
   0xb LB: > { %s1316_s3 = sadd.s32 4294967295, %s1225_s20   ;;  %s883_s21 = sadd.s32 4294967294, %s1225_s20   ;;  %s1225_s20 = sphi %s1301_s20, %s1677_s20   ;;  %s1221_s19 = sphi %s1299_s19, %s1676_s19   ;;  %s1217_s18 = sphi %s1297_s18, %s1675_s18   ;;  %s1213_s17 = sphi %s1295_s17, %s1674_s17  }
   0xc   : > { %s1320_s22 = sadd.s32 1, %s1225_s20   ;;  %s32_s23 = sadd.s32 1, %s1221_s19 }
   0xd   : > { %s29_s24 = ssub.s32 %s1225_s20, %s1320_s22  ;;  %p39_p0 = scmp.ne.s32.totalorder %s1221_s19, %s1217_s18 }
   0xe   : > { %p30_p1 = scmp.eq.s32.totalorder %s29_s24, 0  ;;  %p40_p2 = scmp.eq.s32.totalorder %s1225_s20, 0 }
   0xf   : > { %p45_p3 = scmp.ne.s32.totalorder %s1217_s18, %s1213_s17  ;;  %p46_p4 = scmp.eq.s32.totalorder %s1316_s3, 0 }
  0x10   : > { %s1332_s25 = scalar_select %p30_p1, %s1221_s19, %s32_s23  }
  0x11   : > { %p1334_p5 = por %p40_p2, %p39_p0  ;;  %p1340_p6 = por %p46_p4, %p45_p3 }
  0x12   : > { %1658 = sst [smem:[#allocation16_spill]] %s1332_s25  ;;  %p137_p7 = scmp.eq.s32.totalorder %s1316_s3, 1 }
  0x13   : > { %p143_p8 = scmp.eq.s32.totalorder %s883_s21, 1  ;;  %p884_p9 = scmp.ge.s32.totalorder %s1225_s20, 1 }
  0x14   : > { %p150_p10 = scmp.lt.s32.totalorder %s1225_s20, 3  ;;  %p1347_p11 = por %p137_p7, %p39_p0 }
  0x15   : > { %p1351_p12 = por %p143_p8, %p45_p3  ;;  %s1664_s2 = sld [smem:[#allocation17_spill]] }
  0x16   : > { %p1355_p13 = pnand %p884_p9, %p150_p10  ;;  %p937_p2 = scmp.lt.s32.totalorder %s1225_s20, 2 }
  0x17   : > { %s1369_s8 = sand.u32 1, %s1221_s19   ;;  %s1255_s11 = smov [#allocation10]  }
  0x18   : > { %p921_p1 = pneg %p1355_p13  ;;  %p1373_p3 = pnand %p937_p2, %p1334_p5 }
  0x19   : > { %s1656_s10 = sshll.u32 %s1369_s8, 6  ;;  %s908_s12 = sshll.u32 %s1225_s20, 6 }
  0x1a   : > { %p922_p7 = pnand %p921_p1, %p46_p4  ;;  %s180_s13 = scalar_lea.vmem [#allocation4], %s1656_s10 }
  0x1b   : > { %s162_s7 = sshll.u32 %s1664_s2, 4  ;;  %s188_s14 = sshll.u32 %s180_s13, 4  ;;  %s163_s7 = int_to_ptr.vmem [resolvable:$true] %s162_s7  ;;  %s189_s14 = int_to_ptr.vmem [resolvable:$true] %s188_s14 }
  0x1c   : > { %924 = dma.vmem_to_smem (!%p922_p7), %s163_s7, 16, %s1255_s11, [#allocation7]  }
  0x1d   : > { %s185_s21 = scalar_lea.hbm %s1651_s0, %s908_s12  ;;  %s177_s24 = scalar_lea.sflag [#allocation5], %s1369_s8 }
  0x1e   : > { %s186_s23 = sshll.u32 %s185_s21, 4  ;;  %p1067_p8 = pneg %p1373_p3  ;;  %s187_s23 = int_to_ptr.hbm [resolvable:$true] %s186_s23 }
  0x1f   : > { %s1063_s26 = sshra.s32 %s187_s23, 4  ;;  %s1070_s11 = scalar_lea.hbm %s1651_s0, 128  ;;  %s1064_s26 = int_to_ptr.hbm [resolvable:$true] %s1063_s26 }
  0x20   : > { %s1065_s5 = scalar_lea.hbm %s1064_s26, 64  ;;  %p1071_p1 = scmp.lt.s32.totalorder %s1064_s26, %s1651_s0 }
  0x21   : > { %p1066_p5 = scmp.ne.s32.totalorder %s1064_s26, %s1065_s5  ;;  %p1072_p2 = scmp.lt.s32.totalorder %s1070_s11, %s1065_s5 }
  0x23   : > { %p1068_p9 = pnand %p1067_p8, %p1066_p5  ;;  %p1073_p7 = por %p1072_p2, %p1071_p1 }
  0x25   : > { %p1069_p10 = pneg %p1068_p9 }
  0x27   : > { %p1074_p0 = pnand %p1073_p7, %p1069_p10 }
  0x29   : > { %1077 = shalt.err (!%p1074_p0)
}
  0x2a   : > { %s1256_s16 = smov 128   ;;  %s1257_s21 = smov 8  }
  0x2b   : > { %928 = dma.hbm_to_vmem [thread:$0]  (!%p1373_p3), %s187_s23, 1024, %s189_s14, %s177_s24, %s1256_s16, %s1256_s16, %s1257_s21  }
  0x2c   : > { %s207_s6 = scalar_lea.hbm %s1652_s1, %s908_s12  ;;  %s1666_s7 = sshll.u32 %s1369_s8, 6 }
  0x2d   : > { %s202_s25 = scalar_lea.vmem [#allocation8], %s1666_s7  ;;  %s208_s26 = sshll.u32 %s207_s6, 4  ;;  %s209_s26 = int_to_ptr.hbm [resolvable:$true] %s208_s26 }
  0x2e   : > { %s210_s13 = sshll.u32 %s202_s25, 4  ;;  %s199_s5 = scalar_lea.sflag [#allocation9], %s1369_s8  ;;  %s211_s13 = int_to_ptr.vmem [resolvable:$true] %s210_s13 }
  0x2f   : > { %s1093_s11 = sshra.s32 %s209_s26, 4  ;;  %s1100_s2 = scalar_lea.hbm %s1652_s1, 128  ;;  %s1094_s11 = int_to_ptr.hbm [resolvable:$true] %s1093_s11 }
  0x30   : > { %s1095_s15 = scalar_lea.hbm %s1094_s11, 64  ;;  %p1101_p10 = scmp.lt.s32.totalorder %s1094_s11, %s1652_s1 }
  0x31   : > { %p1096_p0 = scmp.ne.s32.totalorder %s1094_s11, %s1095_s15  ;;  %p1102_p1 = scmp.lt.s32.totalorder %s1100_s2, %s1095_s15 }
  0x33   : > { %p1098_p5 = pnand %p1096_p0, %p1067_p8  ;;  %p1103_p2 = por %p1102_p1, %p1101_p10 }
  0x35   : > { %p1099_p9 = pneg %p1098_p5 }
  0x37   : > { %p1104_p7 = pnand %p1103_p2, %p1099_p9 }
  0x39   : > { %1107 = shalt.err (!%p1104_p7)
}
  0x3a   : > { %931 = dma.hbm_to_vmem [thread:$0]  (!%p1373_p3), %s209_s26, 1024, %s211_s13, %s199_s5, %s1256_s16, %s1256_s16, %s1257_s21  }
  0x3b   : > { %222 = sbr.rel (%p1355_p13) target bundleno = 681 (0x2a9), region = 36  ;;  %s1418_s25 = sand.u32 (!%p1355_p13), 1, %s1217_s18  }
  0x3c   : > { %s1421_s8 = sshll.u32 (!%p1355_p13), %s1418_s25, 6  ;;  %s225_s24 = scalar_lea.sflag (!%p1355_p13), [#allocation5], %s1418_s25 }
  0x3d   : > { %s228_s6 = scalar_lea.vmem (!%p1355_p13), [#allocation4], %s1421_s8 }
  0x40   : > { %1196 = dma.done.wait (%p1340_p6), %s225_s24, 1024  }
  0x41   : > { %1198 = vsyncadd (%p1340_p6), %s225_s24, 4294966272  ;;  %s235_s30 = scalar_lea.sflag [#allocation9], %s1418_s25  ;;  %s238_s9 = scalar_lea.vmem [#allocation8], %s1421_s8 }
  0x42   : > { %1200 = dma.done.wait (%p1340_p6), %s235_s30, 1024  }
  0x43   : > { %1202 = vsyncadd (%p1340_p6), %s235_s30, 4294966272 }
  0x44   : > { %1204 = dma.done.wait (%p46_p4), [#allocation7], 16  }
  0x45   : > { %1206 = vsyncadd (%p46_p4), [#allocation7], 4294967280 }
  0x46   : > { %249 = sfence }
  0x47   : > { %vm275_vm0 = vcmask 146432   ;;  %s280_s16 = sld [smem:[#allocation3]]  ;;  %vm278_vm1 = vcmask 140288   ;;  %v1258_v0 = vmov 0.0   ;;  %s274_s21 = scalar_lea.vmem [#allocation11], %s1421_s8 }
  0x48   : > { %276 = vst.msk [vmem:[#allocation2] sm:$0xff] %vm275_vm0, %v1258_v0  ;;  %s1444_s27 = smov 0  }
  0x49   : > { %277 = vst.msk [vmem:[#allocation2 + $0x8] sm:$0xff] %vm275_vm0, %v1258_v0 }
  0x4a   : > { %279 = vst.msk [vmem:[#allocation2 + $0x10] sm:$0x3] %vm278_vm1, %v1258_v0 }
  0x4d   : > { %v281_v1 = vstv %s280_s16  }
  0x4e   : > { %v1667_v2 = vmov %v281_v1 }
  0x4f LB: >> { %s898_s7 = sshll.u32 %s1237_s27, 4  ;;  %s1259_s26 = smov 1   ;;  %vm302_vm2 = vcmask 138248   ;;  %vm324_vm3 = vcmask 1046528   ;;  %vm343_vm4 = vcmask 1045504   ;;  %s1237_s27 = sphi %s1444_s27, %s287_s27   ;;  %v1233_v1 = vphi %v281_v1, %v1669_v1   ;;  %v1229_v2 = vphi %v1667_v2, %v1668_v2  }
  0x50   : >> { %s291_s13 = scalar_lea.vmem %s228_s6, %s898_s7 [#allocation4]  ;;  %s1459_s5 = smul.u32 9, %s1237_s27 }
  0x51   : >> { %v292_v3 = vld [vmem:[%s291_s13] sm:$0xff]  ;;  %v293_v4 = vld [vmem:[%s291_s13 + $0x8] sm:$0xff]  ;;  %s287_s27 = sadd.s32 1, %s1237_s27  }
  0x52   : >> { %296 = vrot.lane.b32.xlu0 %v292_v3, %s1259_s26  ;;  %s412_s11 = sadd.s32 2, %s1459_s5  ;;  %s353_s15 = sadd.s32 1, %s1459_s5 }
  0x53   : >> { %s1463_s14 = sld [smem:[#allocation10 + %s412_s11]]  ;;  %s315_s23 = sadd.s32 3, %s1459_s5 }
  0x54   : >> { %s1466_s2 = sld [smem:[#allocation10 + %s353_s15]]  ;;  %s334_s10 = sadd.s32 6, %s1459_s5 }
  0x55   : >> { %s1470_s12 = sld [smem:[#allocation10 + %s1459_s5]]  ;;  %s368_s16 = sadd.s32 4, %s1459_s5 }
  0x56   : >> { %s316_s24 = sld [smem:[#allocation10 + %s315_s23]]  ;;  %s390_s13 = sadd.s32 7, %s1459_s5 }
  0x57   : >> { %s335_s30 = sld [smem:[#allocation10 + %s334_s10]]  ;;  %s449_s11 = sadd.s32 8, %s1459_s5 }
  0x58   : >> { %s369_s7 = sld [smem:[#allocation10 + %s368_s16]]  ;;  %s427_s15 = sadd.s32 5, %s1459_s5 }
  0x59   : >> { %v414_v6 = vstv %s1463_s14  ;;  %s1260_s14 = smov 126   ;;  %s1261_s23 = smov 127  }
  0x5a   : >> { %298 = vrot.lane.b32.xlu0 %v293_v4, %s1259_s26  ;;  %v355_v7 = vstv %s1466_s2  ;;  %s391_s26 = sld [smem:[#allocation10 + %s390_s13]]  ;;  %p284_p4 = scmp.ge.s32.totalorder %s287_s27, 4  }
  0x5b   : >> { %v310_v8 = vstv %s1470_s12  ;;  %s450_s2 = sld [smem:[#allocation10 + %s449_s11]]  ;;  %s1529_s5 = smov (%p284_p4), 0  }
  0x5c   : >> { %v317_v9 = vstv %s316_s24  ;;  %s428_s10 = sld [smem:[#allocation10 + %s427_s15]] }
  0x5d   : >> { %v336_v12 = vstv %s335_s30 }
  0x5e   : >> { %v370_v18 = vstv %s369_s7 }
  0x60   : >> { %v392_v20 = vstv %s391_s26 }
  0x61   : >> { %v451_v31 = vstv %s450_s2 }
  0x62   : >> { %v429_v32 = vstv %s428_s10 }
  0xc4   : >> { %v297_v5 = vpop.permute.xlu0 %296 }
  0xc5   : >> { %303 = vst.msk [vmem:[#allocation2 + $0x1] sm:$0xff] %vm302_vm2, %v297_v5 }
  0xcc   : >> { %v299_v10 = vpop.permute.xlu0 %298  ;;  %v1478_v11 = vld [vmem:[#allocation2] sm:$0xff] }
  0xcd   : >> { %304 = vst.msk [vmem:[#allocation2 + $0x9] sm:$0xff] %vm302_vm2, %v299_v10  ;;  %v415_v13 = vmul.f32 %v414_v6, %v1478_v11  ;;  %v356_v14 = vmul.f32 %v355_v7, %v1478_v11  ;;  %v311_v15 = vmul.f32 %v310_v8, %v1478_v11  ;;  %v318_v16 = vmul.f32 %v317_v9, %v1478_v11 }
  0xce   : >> { %v337_v17 = vmul.f32 %v336_v12, %v1478_v11  ;;  %v371_v19 = vmul.f32 %v370_v18, %v1478_v11  ;;  %v393_v27 = vmul.f32 %v392_v20, %v1478_v11  ;;  %v452_v56 = vmul.f32 %v451_v31, %v1478_v11 }
  0xcf   : >> { %419 = vrot.lane.b32.xlu2 %v415_v13, %s1260_s14  ;;  %360 = vrot.lane.b32.xlu1 %v356_v14, %s1261_s23  ;;  %v313_v38 = vadd.f32 %v1233_v1, %v311_v15  ;;  %v325_v39 = vrot.slane %v318_v16, 1  ;;  %v430_v59 = vmul.f32 %v429_v32, %v1478_v11 }
  0xd0   : >> { %v377_v29 = vrot.slane %v371_v19, 1  ;;  %v399_v36 = vrot.slane %v393_v27, 2  ;;  %v344_v43 = vrot.slane %v337_v17, 2 }
  0xd4   : >> { %v307_v21 = vld [vmem:[#allocation2 + $0x8] sm:$0xff]  ;;  %v308_v22 = vld [vmem:[#allocation2 + $0x10] sm:$0x3] }
  0xd5   : >> { %v416_v23 = vmul.f32 %v414_v6, %v307_v21  ;;  %v357_v24 = vmul.f32 %v355_v7, %v307_v21  ;;  %v372_v25 = vmul.f32 %v370_v18, %v307_v21  ;;  %v394_v26 = vmul.f32 %v392_v20, %v307_v21 }
  0xd6   : >> { %v395_v28 = vmul.f32 %v392_v20, %v308_v22  ;;  %v373_v35 = vmul.f32 %v370_v18, %v308_v22  ;;  %v453_v40 = vmul.f32 %v451_v31, %v307_v21  ;;  %v319_v41 = vmul.f32 %v317_v9, %v307_v21 }
  0xd7   : >> { %421 = vrot.lane.b32.xlu0 %v416_v23, %s1260_s14  ;;  %362 = vrot.lane.b32.xlu1 %v357_v24, %s1261_s23  ;;  %v378_v30 = vrot.slane %v372_v25, 1  ;;  %v400_v34 = vrot.slane %v394_v26, 2  ;;  %v338_v42 = vmul.f32 %v336_v12, %v307_v21  ;;  %v431_v44 = vmul.f32 %v429_v32, %v307_v21 }
  0xd8   : >> { %v402_v37 = vrot.slane %v395_v28, 2  ;;  %v320_v45 = vmul.f32 %v317_v9, %v308_v22  ;;  %v339_v46 = vmul.f32 %v336_v12, %v308_v22  ;;  %v312_v47 = vmul.f32 %v310_v8, %v307_v21 }
  0xd9   : >> { %v379_v33 = vsel %vm324_vm3, %v377_v29, %v378_v30  ;;  %v401_v48 = vsel %vm343_vm4, %v399_v36, %v400_v34  ;;  %v380_v49 = vrot.slane %v373_v35, 1  ;;  %v326_v50 = vrot.slane %v319_v41, 1 }
  0xda   : >> { %382 = vrot.lane.b32.xlu2 %v379_v33, %s1261_s23  ;;  %v345_v51 = vrot.slane %v338_v42, 2  ;;  %v403_v52 = vsel %vm343_vm4, %v400_v34, %v402_v37  ;;  %v328_v53 = vrot.slane %v320_v45, 1  ;;  %v347_v54 = vrot.slane %v339_v46, 2 }
  0xdb   : >> { %v314_v55 = vadd.f32 %v1229_v2, %v312_v47  ;;  %v327_v57 = vsel %vm324_vm3, %v325_v39, %v326_v50  ;;  %v381_v63 = vsel %vm324_vm3, %v378_v30, %v380_v49  ;;  %v432_v0 = vmul.f32 %v429_v32, %v308_v22 }
  0xdc   : >> { %v346_v58 = vsel %vm343_vm4, %v344_v43, %v345_v51  ;;  %v332_v60 = vadd.f32 %v327_v57, %v313_v38  ;;  %v329_v61 = vsel %vm324_vm3, %v326_v50, %v328_v53  ;;  %v348_v62 = vsel %vm343_vm4, %v345_v51, %v347_v54 }
  0xdd   : >> { %v333_v1 = vadd.f32 %v329_v61, %v314_v55  ;;  %v459_v2 = vrot.slane %v453_v40, 2  ;;  %v437_v3 = vrot.slane %v431_v44, 1  ;;  %v458_v6 = vrot.slane %v452_v56, 2 }
  0xde   : >> { %v351_v4 = vadd.f32 %v346_v58, %v332_v60  ;;  %v436_v7 = vrot.slane %v430_v59, 1  ;;  %v439_v8 = vrot.slane %v432_v0, 1  ;;  %v454_v11 = vmul.f32 %v451_v31, %v308_v22 }
  0xdf   : >> { %404 = vrot.lane.b32.xlu0 %v401_v48, %s1261_s23  ;;  %406 = vrot.lane.b32.xlu1 %v403_v52, %s1261_s23  ;;  %v352_v5 = vadd.f32 %v348_v62, %v333_v1  ;;  %v460_v9 = vsel %vm343_vm4, %v458_v6, %v459_v2 }
  0xe0   : >> { %v438_v10 = vsel %vm324_vm3, %v436_v7, %v437_v3  ;;  %v440_v12 = vsel %vm324_vm3, %v437_v3, %v439_v8  ;;  %v461_v13 = vrot.slane %v454_v11, 2 }
  0xe2   : >> { %384 = vrot.lane.b32.xlu2 %v381_v63, %s1261_s23  ;;  %v462_v14 = vsel %vm343_vm4, %v459_v2, %v461_v13 }
  0xe7   : >> { %463 = vrot.lane.b32.xlu0 %v460_v9, %s1260_s14  ;;  %441 = vrot.lane.b32.xlu1 %v438_v10, %s1260_s14 }
  0xea   : >> { %443 = vrot.lane.b32.xlu2 %v440_v12, %s1260_s14 }
  0xef   : >> { %465 = vrot.lane.b32.xlu1 %v462_v14, %s1260_s14 }
 0x129   : >> { %v420_v16 = vpop.permute.xlu2 %419 }
 0x134   : >> { %v383_v19 = vpop.permute.xlu2 %382 }
 0x13c   : >> { %v385_v26 = vpop.permute.xlu2 %384 }
 0x141   : >> { %v361_v15 = vpop.permute.xlu1 %360 }
 0x142   : >> { %v366_v20 = vadd.f32 %v361_v15, %v351_v4 }
 0x144   : >> { %v388_v24 = vadd.f32 %v383_v19, %v366_v20  ;;  %v444_v35 = vpop.permute.xlu2 %443 }
 0x149   : >> { %v422_v17 = vpop.permute.xlu0 %421  ;;  %v363_v18 = vpop.permute.xlu1 %362 }
 0x14a   : >> { %v367_v23 = vadd.f32 %v363_v18, %v352_v5 }
 0x14c   : >> { %v389_v27 = vadd.f32 %v385_v26, %v367_v23 }
 0x151   : >> { %v405_v21 = vpop.permute.xlu0 %404  ;;  %v407_v22 = vpop.permute.xlu1 %406 }
 0x152   : >> { %v410_v25 = vadd.f32 %v405_v21, %v388_v24  ;;  %v411_v28 = vadd.f32 %v407_v22, %v389_v27 }
 0x154   : >> { %v425_v29 = vadd.f32 %v420_v16, %v410_v25  ;;  %v426_v33 = vadd.f32 %v422_v17, %v411_v28 }
 0x156   : >> { %v448_v36 = vadd.f32 %v444_v35, %v426_v33 }
 0x159   : >> { %v442_v30 = vpop.permute.xlu1 %441  ;;  %v464_v32 = vpop.permute.xlu0 %463 }
 0x15a   : >> { %v447_v31 = vadd.f32 %v442_v30, %v425_v29 }
 0x15c   : >> { %v469_v34 = vadd.f32 %v464_v32, %v447_v31  }
 0x15e   : >> { %v1669_v1 = vmov %v469_v34 }
 0x160   : > { %286 = sbr.rel (!%p284_p4) target bundleno = 79 (0x4f), region = 125 }
 0x161   : >> { %v466_v37 = vpop.permute.xlu1 %465 }
 0x162   : >> { %v470_v38 = vadd.f32 %v466_v37, %v448_v36  }
 0x164   : >> { %v1668_v2 = vmov %v470_v38 }
 0x165 LB: >> { %s899_s27 = sshll.u32 %s1249_s5, 4  ;;  %s1262_s24 = smov 1   ;;  %s1249_s5 = sphi %s1529_s5, %s476_s5   ;;  %v1245_v34 = vphi %v469_v34, %v1671_v34   ;;  %v1241_v38 = vphi %v470_v38, %v1670_v38  }
 0x166   : >> { %s480_s12 = scalar_lea.vmem %s238_s9, %s899_s27 [#allocation8]  ;;  %s494_s30 = sadd.s32 4, %s1249_s5 }
 0x167   : >> { %v481_v39 = vld [vmem:[%s480_s12] sm:$0xff]  ;;  %v482_v40 = vld [vmem:[%s480_s12 + $0x8] sm:$0xff]  ;;  %s1544_s16 = smul.u32 9, %s494_s30  ;;  %s476_s5 = sadd.s32 1, %s1249_s5  }
 0x168   : >> { %485 = vrot.lane.b32.xlu0 %v481_v39, %s1262_s24  ;;  %p473_p6 = scmp.ge.s32.totalorder %s476_s5, 4  }
 0x169   : >> { %s602_s7 = sadd.s32 2, %s1544_s16  ;;  %s543_s13 = sadd.s32 1, %s1544_s16 }
 0x16a   : >> { %s1548_s26 = sld [smem:[#allocation10 + %s602_s7]]  ;;  %s505_s11 = sadd.s32 3, %s1544_s16 }
 0x16b   : >> { %s1551_s15 = sld [smem:[#allocation10 + %s543_s13]]  ;;  %s524_s14 = sadd.s32 6, %s1544_s16 }
 0x16c   : >> { %s1555_s23 = sld [smem:[#allocation10 + %s1544_s16]]  ;;  %s558_s27 = sadd.s32 4, %s1544_s16 }
 0x16d   : >> { %s506_s2 = sld [smem:[#allocation10 + %s505_s11]]  ;;  %s639_s7 = sadd.s32 8, %s1544_s16 }
 0x16e   : >> { %s525_s10 = sld [smem:[#allocation10 + %s524_s14]]  ;;  %s617_s13 = sadd.s32 5, %s1544_s16 }
 0x16f   : >> { %s559_s12 = sld [smem:[#allocation10 + %s558_s27]]  ;;  %s1264_s11 = smov 127  }
 0x170   : >> { %487 = vrot.lane.b32.xlu0 %v482_v40, %s1262_s24  ;;  %s580_s24 = sadd.s32 7, %s1544_s16  ;;  %v604_v42 = vstv %s1548_s26  ;;  %s1263_s26 = smov 126  }
 0x171   : >> { %v545_v43 = vstv %s1551_s15  ;;  %s581_s30 = sld [smem:[#allocation10 + %s580_s24]]  ;;  %s1251_s5 = smov (%p473_p6), 0  }
 0x172   : >> { %v500_v44 = vstv %s1555_s23  ;;  %s640_s15 = sld [smem:[#allocation10 + %s639_s7]] }
 0x173   : >> { %v507_v45 = vstv %s506_s2  ;;  %s618_s14 = sld [smem:[#allocation10 + %s617_s13]] }
 0x174   : >> { %v526_v48 = vstv %s525_s10 }
 0x175   : >> { %v560_v54 = vstv %s559_s12 }
 0x177   : >> { %v582_v56 = vstv %s581_s30 }
 0x178   : >> { %v641_v3 = vstv %s640_s15 }
 0x179   : >> { %v619_v4 = vstv %s618_s14 }
 0x1da   : >> { %v486_v41 = vpop.permute.xlu0 %485 }
 0x1db   : >> { %492 = vst.msk [vmem:[#allocation2 + $0x1] sm:$0xff] %vm302_vm2, %v486_v41 }
 0x1e2   : >> { %v488_v46 = vpop.permute.xlu0 %487  ;;  %v1563_v47 = vld [vmem:[#allocation2] sm:$0xff] }
 0x1e3   : >> { %493 = vst.msk [vmem:[#allocation2 + $0x9] sm:$0xff] %vm302_vm2, %v488_v46  ;;  %v605_v49 = vmul.f32 %v604_v42, %v1563_v47  ;;  %v546_v50 = vmul.f32 %v545_v43, %v1563_v47  ;;  %v501_v51 = vmul.f32 %v500_v44, %v1563_v47  ;;  %v508_v52 = vmul.f32 %v507_v45, %v1563_v47 }
 0x1e4   : >> { %v527_v53 = vmul.f32 %v526_v48, %v1563_v47  ;;  %v561_v55 = vmul.f32 %v560_v54, %v1563_v47  ;;  %v583_v63 = vmul.f32 %v582_v56, %v1563_v47  ;;  %v642_v28 = vmul.f32 %v641_v3, %v1563_v47 }
 0x1e5   : >> { %609 = vrot.lane.b32.xlu2 %v605_v49, %s1263_s26  ;;  %550 = vrot.lane.b32.xlu1 %v546_v50, %s1264_s11  ;;  %v503_v10 = vadd.f32 %v1245_v34, %v501_v51  ;;  %v515_v11 = vrot.slane %v508_v52, 1  ;;  %v620_v31 = vmul.f32 %v619_v4, %v1563_v47 }
 0x1e6   : >> { %v567_v1 = vrot.slane %v561_v55, 1  ;;  %v589_v8 = vrot.slane %v583_v63, 2  ;;  %v534_v15 = vrot.slane %v527_v53, 2 }
 0x1ea   : >> { %v497_v57 = vld [vmem:[#allocation2 + $0x8] sm:$0xff]  ;;  %v498_v58 = vld [vmem:[#allocation2 + $0x10] sm:$0x3] }
 0x1eb   : >> { %v606_v59 = vmul.f32 %v604_v42, %v497_v57  ;;  %v547_v60 = vmul.f32 %v545_v43, %v497_v57  ;;  %v562_v61 = vmul.f32 %v560_v54, %v497_v57  ;;  %v584_v62 = vmul.f32 %v582_v56, %v497_v57 }
 0x1ec   : >> { %v585_v0 = vmul.f32 %v582_v56, %v498_v58  ;;  %v563_v7 = vmul.f32 %v560_v54, %v498_v58  ;;  %v643_v12 = vmul.f32 %v641_v3, %v497_v57  ;;  %v509_v13 = vmul.f32 %v507_v45, %v497_v57 }
 0x1ed   : >> { %611 = vrot.lane.b32.xlu0 %v606_v59, %s1263_s26  ;;  %552 = vrot.lane.b32.xlu1 %v547_v60, %s1264_s11  ;;  %v568_v2 = vrot.slane %v562_v61, 1  ;;  %v590_v6 = vrot.slane %v584_v62, 2  ;;  %v528_v14 = vmul.f32 %v526_v48, %v497_v57  ;;  %v621_v16 = vmul.f32 %v619_v4, %v497_v57 }
 0x1ee   : >> { %v592_v9 = vrot.slane %v585_v0, 2  ;;  %v510_v17 = vmul.f32 %v507_v45, %v498_v58  ;;  %v529_v18 = vmul.f32 %v526_v48, %v498_v58  ;;  %v502_v19 = vmul.f32 %v500_v44, %v497_v57 }
 0x1ef   : >> { %v569_v5 = vsel %vm324_vm3, %v567_v1, %v568_v2  ;;  %v591_v20 = vsel %vm343_vm4, %v589_v8, %v590_v6  ;;  %v570_v21 = vrot.slane %v563_v7, 1  ;;  %v516_v22 = vrot.slane %v509_v13, 1 }
 0x1f0   : >> { %572 = vrot.lane.b32.xlu2 %v569_v5, %s1264_s11  ;;  %v535_v23 = vrot.slane %v528_v14, 2  ;;  %v593_v24 = vsel %vm343_vm4, %v590_v6, %v592_v9  ;;  %v518_v25 = vrot.slane %v510_v17, 1  ;;  %v537_v26 = vrot.slane %v529_v18, 2 }
 0x1f1   : >> { %v504_v27 = vadd.f32 %v1241_v38, %v502_v19  ;;  %v517_v29 = vsel %vm324_vm3, %v515_v11, %v516_v22  ;;  %v571_v35 = vsel %vm324_vm3, %v568_v2, %v570_v21  ;;  %v622_v36 = vmul.f32 %v619_v4, %v498_v58 }
 0x1f2   : >> { %v536_v30 = vsel %vm343_vm4, %v534_v15, %v535_v23  ;;  %v522_v32 = vadd.f32 %v517_v29, %v503_v10  ;;  %v519_v33 = vsel %vm324_vm3, %v516_v22, %v518_v25  ;;  %v538_v34 = vsel %vm343_vm4, %v535_v23, %v537_v26 }
 0x1f3   : >> { %v523_v37 = vadd.f32 %v519_v33, %v504_v27  ;;  %v649_v38 = vrot.slane %v643_v12, 2  ;;  %v627_v39 = vrot.slane %v621_v16, 1  ;;  %v648_v42 = vrot.slane %v642_v28, 2 }
 0x1f4   : >> { %v541_v40 = vadd.f32 %v536_v30, %v522_v32  ;;  %v626_v43 = vrot.slane %v620_v31, 1  ;;  %v629_v44 = vrot.slane %v622_v36, 1  ;;  %v644_v47 = vmul.f32 %v641_v3, %v498_v58 }
 0x1f5   : >> { %594 = vrot.lane.b32.xlu0 %v591_v20, %s1264_s11  ;;  %596 = vrot.lane.b32.xlu1 %v593_v24, %s1264_s11  ;;  %v542_v41 = vadd.f32 %v538_v34, %v523_v37  ;;  %v650_v45 = vsel %vm343_vm4, %v648_v42, %v649_v38 }
 0x1f6   : >> { %v628_v46 = vsel %vm324_vm3, %v626_v43, %v627_v39  ;;  %v630_v48 = vsel %vm324_vm3, %v627_v39, %v629_v44  ;;  %v651_v49 = vrot.slane %v644_v47, 2 }
 0x1f8   : >> { %574 = vrot.lane.b32.xlu2 %v571_v35, %s1264_s11  ;;  %v652_v50 = vsel %vm343_vm4, %v649_v38, %v651_v49 }
 0x1fd   : >> { %653 = vrot.lane.b32.xlu0 %v650_v45, %s1263_s26  ;;  %631 = vrot.lane.b32.xlu1 %v628_v46, %s1263_s26 }
 0x200   : >> { %633 = vrot.lane.b32.xlu2 %v630_v48, %s1263_s26 }
 0x205   : >> { %655 = vrot.lane.b32.xlu1 %v652_v50, %s1263_s26 }
 0x23f   : >> { %v610_v52 = vpop.permute.xlu2 %609 }
 0x24a   : >> { %v573_v55 = vpop.permute.xlu2 %572 }
 0x252   : >> { %v575_v62 = vpop.permute.xlu2 %574 }
 0x257   : >> { %v551_v51 = vpop.permute.xlu1 %550 }
 0x258   : >> { %v556_v56 = vadd.f32 %v551_v51, %v541_v40 }
 0x25a   : >> { %v578_v60 = vadd.f32 %v573_v55, %v556_v56  ;;  %v634_v7 = vpop.permute.xlu2 %633 }
 0x25f   : >> { %v612_v53 = vpop.permute.xlu0 %611  ;;  %v553_v54 = vpop.permute.xlu1 %552 }
 0x260   : >> { %v557_v59 = vadd.f32 %v553_v54, %v542_v41 }
 0x262   : >> { %v579_v63 = vadd.f32 %v575_v62, %v557_v59 }
 0x267   : >> { %v595_v57 = vpop.permute.xlu0 %594  ;;  %v597_v58 = vpop.permute.xlu1 %596 }
 0x268   : >> { %v600_v61 = vadd.f32 %v595_v57, %v578_v60  ;;  %v601_v0 = vadd.f32 %v597_v58, %v579_v63 }
 0x26a   : >> { %v615_v1 = vadd.f32 %v610_v52, %v600_v61  ;;  %v616_v5 = vadd.f32 %v612_v53, %v601_v0 }
 0x26c   : >> { %v638_v8 = vadd.f32 %v634_v7, %v616_v5 }
 0x26f   : >> { %v632_v2 = vpop.permute.xlu1 %631  ;;  %v654_v4 = vpop.permute.xlu0 %653 }
 0x270   : >> { %v637_v3 = vadd.f32 %v632_v2, %v615_v1 }
 0x272   : >> { %v659_v6 = vadd.f32 %v654_v4, %v637_v3  }
 0x274   : >> { %v1671_v34 = vmov %v659_v6  ;;  %v900_v11 = vmul.f32 (%p473_p6), -1.442695, %v659_v6 }
 0x276   : > { %475 = sbr.rel (!%p473_p6) target bundleno = 357 (0x165), region = 136  ;;  %1040 = vpow2.f32 (%p473_p6), %v900_v11 }
 0x277   : >> { %v656_v9 = vpop.permute.xlu1 %655 }
 0x278   : >> { %v660_v10 = vadd.f32 %v656_v9, %v638_v8  }
 0x27a   : >> { %v1670_v38 = vmov %v660_v10  ;;  %v901_v12 = vmul.f32 (%p473_p6), -1.442695, %v660_v10 }
 0x27c   : > { %1042 = vpow2.f32 %v901_v12  ;;  %v1041_v13 = vpop.eup %1040 }
 0x27d   : > { %v667_v15 = vadd.f32 1.0, %v1041_v13 }
 0x27f   : > { %1044 = vrcp.f32 %v667_v15  ;;  %vm674_vm5 = vweird.f32 %v667_v15  ;;  %v680_v20 = vand.u32 2147483648, %v667_v15  ;;  %v678_v23 = vand.u32 2147483647, %v667_v15 }
 0x281   : > { %v681_v28 = vor.u32 1.1754944e-38, %v680_v20  ;;  %vm679_vm10 = vcmp.eq.f32.partialorder %v678_v23, 8.507059e+37 }
 0x282   : > { %v1043_v14 = vpop.eup %1042 }
 0x283   : > { %v668_v16 = vadd.f32 1.0, %v1043_v14 }
 0x285   : > { %1046 = vrcp.f32 %v668_v16  ;;  %v1045_v17 = vpop.eup %1044  ;;  %v695_v24 = vand.u32 2147483648, %v668_v16  ;;  %vm689_vm7 = vweird.f32 %v668_v16  ;;  %v693_v26 = vand.u32 2147483647, %v668_v16 }
 0x286   : > { %v670_v19 = vmul.f32 %v1045_v17, %v667_v15  ;;  %vm675_vm6 = vweird.f32 %v1045_v17 }
 0x287   : > { %vm676_vm9 = vmor %vm674_vm5, %vm675_vm6  ;;  %v696_v31 = vor.u32 1.1754944e-38, %v695_v24  ;;  %vm694_vm12 = vcmp.eq.f32.partialorder %v693_v26, 8.507059e+37 }
 0x288   : > { %v671_v22 = vsub.f32 1.0, %v670_v19 }
 0x28a   : > { %v672_v27 = vmul.f32 %v1045_v17, %v671_v22 }
 0x28b   : > { %v1047_v18 = vpop.eup %1046 }
 0x28c   : > { %v685_v21 = vmul.f32 %v1047_v18, %v668_v16  ;;  %vm690_vm8 = vweird.f32 %v1047_v18  ;;  %v673_v30 = vadd.f32 %v1045_v17, %v672_v27 }
 0x28d   : > { %vm691_vm11 = vmor %vm689_vm7, %vm690_vm8 }
 0x28e   : > { %v686_v25 = vsub.f32 1.0, %v685_v21  ;;  %v677_v33 = vsel %vm676_vm9, %v1045_v17, %v673_v30 }
 0x28f   : > { %v682_v34 = vsel %vm679_vm10, %v681_v28, %v677_v33 }
 0x290   : > { %v687_v29 = vmul.f32 %v1047_v18, %v686_v25 }
 0x292   : > { %v688_v32 = vadd.f32 %v1047_v18, %v687_v29 }
 0x294   : > { %v692_v35 = vsel %vm691_vm11, %v1047_v18, %v688_v32 }
 0x295   : > { %v697_v36 = vsel %vm694_vm12, %v696_v31, %v692_v35 }
 0x296 LB: >> { %s902_s16 = sshll.u32 %s1253_s5, 4  ;;  %vm719_vm13 = vcmask 130048   ;;  %s704_s5 = sadd.s32 1, %s1253_s5   ;;  %s1253_s5 = sphi %s1251_s5, %s704_s5  }
 0x297   : >> { %s706_s23 = scalar_lea.vmem %s228_s6, %s902_s16 [#allocation4]  ;;  %s709_s2 = scalar_lea.vmem %s238_s9, %s902_s16 [#allocation8] }
 0x298   : >> { %v707_v37 = vld [vmem:[%s706_s23] sm:$0xff]  ;;  %v708_v39 = vld [vmem:[%s706_s23 + $0x8] sm:$0xff]  ;;  %s718_s10 = scalar_lea.vmem %s274_s21, %s902_s16 [#allocation11]  ;;  %p701_p13 = scmp.ge.s32.totalorder %s704_s5, 4  }
 0x299   : >> { %v710_v38 = vld [vmem:[%s709_s2] sm:$0xff]  ;;  %v711_v41 = vld [vmem:[%s709_s2 + $0x8] sm:$0xff]  ;;  %s910_s27 = sshll.u32 (%p701_p13), %s1316_s3, 6  ;;  %s735_s7 = sshll.u32 (%p701_p13), %s274_s21, 4  ;;  %s736_s7 = int_to_ptr.vmem [resolvable:$true] %s735_s7 }
 0x29a   : >> { %v712_v40 = vsub.f32 %v707_v37, %v710_v38  ;;  %v713_v42 = vsub.f32 %v708_v39, %v711_v41  ;;  %s734_s30 = scalar_lea.hbm (%p701_p13), %s1655_s4, %s910_s27  ;;  %s723_s26 = scalar_lea.sflag (%p701_p13), [#allocation6], %s1418_s25 }
 0x29b   : > { %s737_s13 = sshll.u32 (%p701_p13), %s734_s30, 4  ;;  %s1143_s3 = scalar_lea.hbm (%p701_p13), %s1655_s4, 128  ;;  %s738_s13 = int_to_ptr.hbm [resolvable:$true] %s737_s13 }
 0x29c   : >> { %v714_v43 = vmul.f32 %v712_v40, %v682_v34  ;;  %v715_v44 = vmul.f32 %v713_v42, %v697_v36  ;;  %s1137_s11 = sshra.s32 (%p701_p13), %s738_s13, 4  ;;  %s1138_s11 = int_to_ptr.hbm [resolvable:$true] %s1137_s11 }
 0x29d   : > { %703 = sbr.rel (!%p701_p13) target bundleno = 662 (0x296), region = 147  ;;  %s1139_s15 = scalar_lea.hbm (%p701_p13), %s1138_s11, 64 }
 0x29e   : >> { %v716_v45 = vadd.f32 %v714_v43, %v710_v38  ;;  %v717_v46 = vadd.f32 %v715_v44, %v711_v41  ;;  %p1140_p3 = scmp.ne.s32.totalorder (%p701_p13), %s1138_s11, %s1139_s15  ;;  %p1144_p5 = scmp.lt.s32.totalorder (%p701_p13), %s1138_s11, %s1655_s4 }
 0x29f   : > { %p1145_p9 = scmp.lt.s32.totalorder (%p701_p13), %s1143_s3, %s1139_s15 }
 0x2a0   : >> { %720 = vst.msk [vmem:[%s718_s10] sm:$0xff] %vm719_vm13, %v716_v45  ;;  %p1141_p8 = pnand (%p701_p13), %p1140_p3, %p1347_p11 }
 0x2a1   : >> { %721 = vst.msk [vmem:[%s718_s10 + $0x8] sm:$0xff] %vm719_vm13, %v717_v46  ;;  %p1146_p10 = por (%p701_p13), %p1145_p9, %p1144_p5 }
 0x2a2   : > { %p1142_p0 = pneg %p1141_p8 }
 0x2a4   : > { %p1147_p1 = pnand %p1146_p10, %p1142_p0 }
 0x2a6   : > { %1150 = shalt.err (!%p1147_p1)
}
 0x2a7   : > { %s1265_s25 = smov 128   ;;  %s1266_s8 = smov 8  }
 0x2a8   : > { %919 = dma.vmem_to_hbm [thread:$0]  (%p1347_p11), %s736_s7, 1024, %s738_s13, %s723_s26, %s1265_s25, %s1265_s25, %s1266_s8  }
 0x2a9 PF: > { %s752_s21 = sand.u32 1, %s1213_s17   ;;  %p1672_p2 = scmp.ge.s32.totalorder %s1225_s20, 2 }
 0x2aa   : > { %s753_s16 = scalar_lea.sflag [#allocation6], %s752_s21 }
 0x2ab   : > { %p933_p7 = pnand %p1672_p2, %p1351_p12 }
 0x2ad   : > { %p934_p4 = pneg %p933_p7 }
 0x2af   : > { %1208 = dma.done.wait (%p934_p4), %s753_s16, 1024  }
 0x2b0   : > { %1210 = vsyncadd (%p934_p4), %s753_s16, 4294966272  ;;  %s1673_s23 = sld [smem:[#allocation16_spill]]  ;;  %p22_p6 = scmp.ge.s32.totalorder %s1320_s22, 4  }
 0x2b1   : > { %s1674_s17 = smov %s1217_s18  ;;  %s1675_s18 = smov %s1221_s19 }
 0x2b2   : > { %s1677_s20 = smov %s1320_s22  ;;  %24 = sbr.rel (!%p22_p6) target bundleno = 11 (0xb), region = 158 }
 0x2b6   : > { %s1676_s19 = smov %s1673_s23 }
 0x2b7   :  { %759 = vsyncpa [#allocation5], 1 }
 0x2b8   :  { %761 = vsyncpa [#allocation5 + $0x1], 1 }
 0x2b9   :  { %762 = vsyncpa [#allocation9], 1 }
 0x2ba   :  { %764 = vsyncpa [#allocation9 + $0x1], 1 }
 0x2bb   :  { %765 = vsyncpa [#allocation6], 1 }
 0x2bc   :  { %767 = vsyncpa [#allocation6 + $0x1], 1 }
 0x2bd   :  { %768 = vsyncpa [#allocation7], 1 }
 0x2be   :  { %770 = vsyncpa [#allocation7 + $0x1], 1 }

</bundles_post_ra>
